<compile_context>
chip_gen: v7x
topology: tpu7x:2x2x1
jax: 0.10.0
libtpu: 0.0.40
codegen_flags: <defaults>
</compile_context>

<pallas_src>
import jax
import jax.numpy as jnp
from jax import lax
from jax.experimental import pallas as pl
from jax.experimental.pallas import tpu as pltpu


def _round_up(x, m):
    return ((x + m - 1) // m) * m


def spatial_aware_kernel(
    feat_ref, pos_ref,
    se_w1_ref, se_b1_ref, se_w2_ref, se_b2_ref,
    fu_w1f_ref, fu_w1s_ref, fu_b1_ref,
    ln_g_ref, ln_b_ref,
    fu_w2_ref, fu_b2_ref,
    out_ref,
):
    feat = feat_ref[...]                                   # (TM, H), input dtype
    feat_f32 = feat.astype(jnp.float32)
    pos = pos_ref[...].astype(jnp.float32)                 # (TM, 3)

    # --- spatial_encoder layer 1: Linear(3, H/4) as VPU broadcast-FMAs
    #     (K=3 is far too small for the MXU) -> SiLU ---
    se_w1 = se_w1_ref[...].astype(jnp.float32)             # (3, H/4)
    h1 = (pos[:, 0:1] * se_w1[0:1, :]
          + pos[:, 1:2] * se_w1[1:2, :]
          + pos[:, 2:3] * se_w1[2:3, :]
          + se_b1_ref[...])
    h1 = h1 * jax.nn.sigmoid(h1)                           # SiLU

    # --- spatial_encoder layer 2: Linear(H/4, H/2) (small, keep f32) ---
    sp = jnp.dot(h1, se_w2_ref[...],
                 preferred_element_type=jnp.float32) + se_b2_ref[...]

    # --- feature_fusion Linear(H + H/2, H), concat folded away.
    #     bf16 operands on the MXU, f32 accumulation. ---
    z = (jnp.dot(feat.astype(jnp.bfloat16), fu_w1f_ref[...],
                 preferred_element_type=jnp.float32)
         + jnp.dot(sp.astype(jnp.bfloat16), fu_w1s_ref[...],
                   preferred_element_type=jnp.float32)
         + fu_b1_ref[...])

    # --- LayerNorm(H), eps=1e-5 (PyTorch default), one-pass statistics ---
    mean = jnp.mean(z, axis=-1, keepdims=True)
    mean_sq = jnp.mean(z * z, axis=-1, keepdims=True)
    var = jnp.maximum(mean_sq - mean * mean, 0.0)
    zn = (z - mean) * lax.rsqrt(var + 1e-5)
    zn = zn * ln_g_ref[...] + ln_b_ref[...]

    # --- SiLU -> Linear(H, H) (bf16 MXU, f32 acc) -> residual (f32) ---
    zn = zn * jax.nn.sigmoid(zn)
    out = jnp.dot(zn.astype(jnp.bfloat16), fu_w2_ref[...],
                  preferred_element_type=jnp.float32) + fu_b2_ref[...]

    out_ref[...] = (out + feat_f32).astype(out_ref.dtype)


def spatial_aware_forward(features, positions, params, *, row_tile=512):
    """features: [B, N, H], positions: [B, N, 3] -> [B, N, H]."""
    B, N, H = features.shape
    M = B * N
    feat2d = features.reshape(M, H)
    pos2d = positions.reshape(M, 3)

    (se_w1, se_b1, se_w2, se_b2,
     fu_w1, fu_b1, ln_g, ln_b, fu_w2, fu_b2) = params

    H4 = se_w1.shape[1]
    H2 = se_w2.shape[1]

    # Fold the concat; pre-cast the large fusion weights to bf16 (MXU-native on
    # v5e/v6e/v7x, halves their HBM traffic / VMEM footprint).
    fu_w1f = fu_w1[:H, :].astype(jnp.bfloat16)       # (H, H)
    fu_w1s = fu_w1[H:, :].astype(jnp.bfloat16)       # (H/2, H)
    fu_w2b = fu_w2.astype(jnp.bfloat16)              # (H, H)

    # Biases / affine params as (1, D) arrays for a clean VMEM layout.
    se_b1 = se_b1.reshape(1, H4).astype(jnp.float32)
    se_b2 = se_b2.reshape(1, H2).astype(jnp.float32)
    fu_b1 = fu_b1.reshape(1, H).astype(jnp.float32)
    ln_g = ln_g.reshape(1, H).astype(jnp.float32)
    ln_b = ln_b.reshape(1, H).astype(jnp.float32)
    fu_b2 = fu_b2.reshape(1, H).astype(jnp.float32)

    # Large row tile (amortise per-step overhead, fill the MXU), clamped for
    # small inputs and padded for ragged M.
    row_tile = max(8, min(row_tile, _round_up(M, 8)))
    M_pad = _round_up(M, row_tile)
    if M_pad != M:
        feat2d = jnp.pad(feat2d, ((0, M_pad - M), (0, 0)))
        pos2d = jnp.pad(pos2d, ((0, M_pad - M), (0, 0)))
    grid = (M_pad // row_tile,)

    def row_spec(ncols):
        return pl.BlockSpec((row_tile, ncols), lambda i: (i, 0))

    def const_spec(shape):
        # Constant index_map => the block never changes across the grid, so
        # single-buffer it (double-buffering resident weights buys nothing and
        # doubles their VMEM use).
        return pl.BlockSpec(shape, lambda i: (0, 0), pipeline_mode=pl.Buffered(1))

    # Explicit VMEM budget: single-buffered weights + double-buffered row tiles,
    # clamped so it is always valid on v7x's 64 MiB physical VMEM.
    weight_bytes = ((3 * H4 + H4 * H2) * 4            # small f32 encoder weights
                    + (H * H + H2 * H + H * H) * 2)   # bf16 fusion weights
    bias_bytes = (H4 + H2 + 4 * H) * 4
    act_bytes = 2 * row_tile * (H * 4 + 3 * 4 + H * 4)  # 2x (feat + pos + out)
    budget = weight_bytes + bias_bytes + act_bytes
    vmem_limit = int(min(max(2 * budget, 16 * 1024 * 1024), 48 * 1024 * 1024))

    flops = 2 * M_pad * (3 * H4 + H4 * H2 + (H + H2) * H + H * H)
    transcendentals = M_pad * (H4 + H)                # two SiLUs (one sigmoid each)
    bytes_accessed = (M_pad * (2 * H * 4 + 3 * 4)     # feat in + out + pos
                      + weight_bytes + bias_bytes)

    # TODO(synk): for configurations with H < 128 the (row_tile, H) output stores
    # are masked partial stores; a lane-dense layout (folding tokens into the last
    # dim) would be needed for peak store bandwidth.
    out2d = pl.pallas_call(
        spatial_aware_kernel,
        out_shape=jax.ShapeDtypeStruct((M_pad, H), features.dtype),
        grid_spec=pltpu.PrefetchScalarGridSpec(
            num_scalar_prefetch=0,
            grid=grid,
            in_specs=[
                row_spec(H),                 # features tile
                row_spec(3),                 # positions tile
                const_spec(se_w1.shape),     # (3, H/4)     f32
                const_spec(se_b1.shape),
                const_spec(se_w2.shape),     # (H/4, H/2)   f32
                const_spec(se_b2.shape),
                const_spec(fu_w1f.shape),    # (H, H)       bf16
                const_spec(fu_w1s.shape),    # (H/2, H)     bf16
                const_spec(fu_b1.shape),
                const_spec(ln_g.shape),
                const_spec(ln_b.shape),
                const_spec(fu_w2b.shape),    # (H, H)       bf16
                const_spec(fu_b2.shape),
            ],
            out_specs=row_spec(H),
        ),
        compiler_params=pltpu.CompilerParams(
            dimension_semantics=("parallel",),
            vmem_limit_bytes=vmem_limit,
        ),
        cost_estimate=pl.CostEstimate(
            flops=int(flops),
            transcendentals=int(transcendentals),
            bytes_accessed=int(bytes_accessed),
        ),
    )(feat2d, pos2d, se_w1, se_b1, se_w2, se_b2,
      fu_w1f, fu_w1s, fu_b1, ln_g, ln_b, fu_w2b, fu_b2)

    if M_pad != M:
        out2d = out2d[:M]
    return out2d.reshape(B, N, H)


def make_params(key, hidden_dim):
    """Deterministic synthetic parameters; weights stored as (in, out)."""
    H = hidden_dim
    H4, H2 = H // 4, H // 2
    ks = jax.random.split(key, 8)

    def lin(k, fan_in, fan_out):
        scale = 1.0 / jnp.sqrt(fan_in)
        kw, kb = jax.random.split(k)
        w = jax.random.uniform(kw, (fan_in, fan_out), jnp.float32, -scale, scale)
        b = jax.random.uniform(kb, (fan_out,), jnp.float32, -scale, scale)
        return w, b

    se_w1, se_b1 = lin(ks[0], 3, H4)
    se_w2, se_b2 = lin(ks[1], H4, H2)
    fu_w1, fu_b1 = lin(ks[2], H + H2, H)
    ln_g = jnp.ones((H,), jnp.float32)
    ln_b = jnp.zeros((H,), jnp.float32)
    fu_w2, fu_b2 = lin(ks[3], H, H)
    return (se_w1, se_b1, se_w2, se_b2, fu_w1, fu_b1, ln_g, ln_b, fu_w2, fu_b2)


def reference_forward(features, positions, params):
    """Pure-JAX f32 reference mirroring the PyTorch module exactly."""
    (se_w1, se_b1, se_w2, se_b2, fu_w1, fu_b1, ln_g, ln_b, fu_w2, fu_b2) = params
    h = jax.nn.silu(positions @ se_w1 + se_b1)
    sp = h @ se_w2 + se_b2
    combined = jnp.concatenate([features, sp], axis=-1)
    z = combined @ fu_w1 + fu_b1
    mean = jnp.mean(z, axis=-1, keepdims=True)
    var = jnp.mean(jnp.square(z - mean), axis=-1, keepdims=True)
    zn = (z - mean) / jnp.sqrt(var + 1e-5) * ln_g + ln_b
    out = jax.nn.silu(zn) @ fu_w2 + fu_b2
    return out + features


if __name__ == "__main__":
    B, N, H = 2, 8, 32
    key = jax.random.PRNGKey(0)
    k_feat, k_pos, k_par = jax.random.split(key, 3)

    features = jax.random.normal(k_feat, (B, N, H), jnp.float32)
    positions = jax.random.normal(k_pos, (B, N, 3), jnp.float32)
    params = make_params(k_par, H)

    out = spatial_aware_forward(features, positions, params)
    out = jax.block_until_ready(out)

    ref = reference_forward(features, positions, params)
    assert out.shape == (B, N, H)
    # bf16 MXU operands (f32 accumulation) => slightly looser tolerance vs the
    # all-f32 reference.
    assert jnp.allclose(out, ref, atol=5e-2, rtol=5e-2), "mismatch vs reference"

    print("KERNEL_OK")
</pallas_src>

<mosaic_0001>
module attributes {stable_mosaic.version = 11 : i64} {
  func.func @spatial_aware_kernel(%arg0: i32, %arg1: memref<16x32xf32, #tpu.memory_space<vmem>>, %arg2: memref<16x3xf32, #tpu.memory_space<vmem>>, %arg3: memref<3x8xf32, #tpu.memory_space<vmem>>, %arg4: memref<1x8xf32, #tpu.memory_space<vmem>>, %arg5: memref<8x16xf32, #tpu.memory_space<vmem>>, %arg6: memref<1x16xf32, #tpu.memory_space<vmem>>, %arg7: memref<32x32xbf16, #tpu.memory_space<vmem>>, %arg8: memref<16x32xbf16, #tpu.memory_space<vmem>>, %arg9: memref<1x32xf32, #tpu.memory_space<vmem>>, %arg10: memref<1x32xf32, #tpu.memory_space<vmem>>, %arg11: memref<1x32xf32, #tpu.memory_space<vmem>>, %arg12: memref<32x32xbf16, #tpu.memory_space<vmem>>, %arg13: memref<1x32xf32, #tpu.memory_space<vmem>>, %arg14: memref<16x32xf32, #tpu.memory_space<vmem>>) attributes {dimension_semantics = [#tpu.dimension_semantics<parallel>], iteration_bounds = array<i64: 1>, scalar_prefetch = 0 : i64, scratch_operands = 0 : i64, tpu.core_type = #tpu.core_type<tc>, window_params = [{transform_indices = @transform_0, window_bounds = array<i64: 16, 32>}, {transform_indices = @transform_1, window_bounds = array<i64: 16, 3>}, {pipeline_mode = #tpu.pipeline_mode<synchronous>, transform_indices = @transform_2, window_bounds = array<i64: 3, 8>}, {pipeline_mode = #tpu.pipeline_mode<synchronous>, transform_indices = @transform_3, window_bounds = array<i64: 1, 8>}, {pipeline_mode = #tpu.pipeline_mode<synchronous>, transform_indices = @transform_4, window_bounds = array<i64: 8, 16>}, {pipeline_mode = #tpu.pipeline_mode<synchronous>, transform_indices = @transform_5, window_bounds = array<i64: 1, 16>}, {pipeline_mode = #tpu.pipeline_mode<synchronous>, transform_indices = @transform_6, window_bounds = array<i64: 32, 32>}, {pipeline_mode = #tpu.pipeline_mode<synchronous>, transform_indices = @transform_7, window_bounds = array<i64: 16, 32>}, {pipeline_mode = #tpu.pipeline_mode<synchronous>, transform_indices = @transform_8, window_bounds = array<i64: 1, 32>}, {pipeline_mode = #tpu.pipeline_mode<synchronous>, transform_indices = @transform_9, window_bounds = array<i64: 1, 32>}, {pipeline_mode = #tpu.pipeline_mode<synchronous>, transform_indices = @transform_10, window_bounds = array<i64: 1, 32>}, {pipeline_mode = #tpu.pipeline_mode<synchronous>, transform_indices = @transform_11, window_bounds = array<i64: 32, 32>}, {pipeline_mode = #tpu.pipeline_mode<synchronous>, transform_indices = @transform_12, window_bounds = array<i64: 1, 32>}, {transform_indices = @transform_13, window_bounds = array<i64: 16, 32>}]} {
    %c0 = arith.constant 0 : index
    %c0_0 = arith.constant 0 : index
    %0 = vector.load %arg1[%c0, %c0_0] : memref<16x32xf32, #tpu.memory_space<vmem>>, vector<16x32xf32>
    %c0_1 = arith.constant 0 : index
    %c0_2 = arith.constant 0 : index
    %1 = vector.load %arg2[%c0_1, %c0_2] : memref<16x3xf32, #tpu.memory_space<vmem>>, vector<16x3xf32>
    %c0_3 = arith.constant 0 : index
    %c0_4 = arith.constant 0 : index
    %2 = vector.load %arg3[%c0_3, %c0_4] : memref<3x8xf32, #tpu.memory_space<vmem>>, vector<3x8xf32>
    %3 = vector.extract_strided_slice %1 {offsets = [0, 0], sizes = [16, 1], strides = [1, 1]} : vector<16x3xf32> to vector<16x1xf32>
    %4 = vector.extract_strided_slice %2 {offsets = [0, 0], sizes = [1, 8], strides = [1, 1]} : vector<3x8xf32> to vector<1x8xf32>
    %5 = vector.broadcast %3 : vector<16x1xf32> to vector<16x8xf32>
    %6 = vector.broadcast %4 : vector<1x8xf32> to vector<16x8xf32>
    %7 = arith.mulf %5, %6 : vector<16x8xf32>
    %8 = vector.extract_strided_slice %1 {offsets = [0, 1], sizes = [16, 1], strides = [1, 1]} : vector<16x3xf32> to vector<16x1xf32>
    %9 = vector.extract_strided_slice %2 {offsets = [1, 0], sizes = [1, 8], strides = [1, 1]} : vector<3x8xf32> to vector<1x8xf32>
    %10 = vector.broadcast %8 : vector<16x1xf32> to vector<16x8xf32>
    %11 = vector.broadcast %9 : vector<1x8xf32> to vector<16x8xf32>
    %12 = arith.mulf %10, %11 : vector<16x8xf32>
    %13 = arith.addf %7, %12 : vector<16x8xf32>
    %14 = vector.extract_strided_slice %1 {offsets = [0, 2], sizes = [16, 1], strides = [1, 1]} : vector<16x3xf32> to vector<16x1xf32>
    %15 = vector.extract_strided_slice %2 {offsets = [2, 0], sizes = [1, 8], strides = [1, 1]} : vector<3x8xf32> to vector<1x8xf32>
    %16 = vector.broadcast %14 : vector<16x1xf32> to vector<16x8xf32>
    %17 = vector.broadcast %15 : vector<1x8xf32> to vector<16x8xf32>
    %18 = arith.mulf %16, %17 : vector<16x8xf32>
    %19 = arith.addf %13, %18 : vector<16x8xf32>
    %c0_5 = arith.constant 0 : index
    %c0_6 = arith.constant 0 : index
    %20 = vector.load %arg4[%c0_5, %c0_6] : memref<1x8xf32, #tpu.memory_space<vmem>>, vector<1x8xf32>
    %21 = vector.broadcast %20 : vector<1x8xf32> to vector<16x8xf32>
    %22 = arith.addf %19, %21 : vector<16x8xf32>
    %23 = arith.negf %22 : vector<16x8xf32>
    %24 = math.exp %23 : vector<16x8xf32>
    %cst = arith.constant 1.000000e+00 : f32
    %25 = vector.broadcast %cst : f32 to vector<16x8xf32>
    %26 = arith.addf %25, %24 : vector<16x8xf32>
    %27 = arith.divf %25, %26 : vector<16x8xf32>
    %28 = arith.mulf %22, %27 : vector<16x8xf32>
    %c0_7 = arith.constant 0 : index
    %c0_8 = arith.constant 0 : index
    %29 = vector.load %arg5[%c0_7, %c0_8] : memref<8x16xf32, #tpu.memory_space<vmem>>, vector<8x16xf32>
    %cst_9 = arith.constant dense<0.000000e+00> : vector<16x16xf32>
    %30 = tpu.matmul %28, %29, %cst_9 {dimension_numbers = #tpu.dot_dimension_numbers<[1], [0], [0], [1], [0, 0, 1, 1], [], []>} : vector<16x8xf32>, vector<8x16xf32>, vector<16x16xf32> -> vector<16x16xf32>
    %c0_10 = arith.constant 0 : index
    %c0_11 = arith.constant 0 : index
    %31 = vector.load %arg6[%c0_10, %c0_11] : memref<1x16xf32, #tpu.memory_space<vmem>>, vector<1x16xf32>
    %32 = vector.broadcast %31 : vector<1x16xf32> to vector<16x16xf32>
    %33 = arith.addf %30, %32 : vector<16x16xf32>
    %34 = arith.truncf %0 : vector<16x32xf32> to vector<16x32xbf16>
    %c0_12 = arith.constant 0 : index
    %c0_13 = arith.constant 0 : index
    %35 = vector.load %arg7[%c0_12, %c0_13] : memref<32x32xbf16, #tpu.memory_space<vmem>>, vector<32x32xbf16>
    %cst_14 = arith.constant dense<0.000000e+00> : vector<16x32xf32>
    %36 = tpu.matmul %34, %35, %cst_14 {dimension_numbers = #tpu.dot_dimension_numbers<[1], [0], [0], [1], [0, 0, 1, 1], [], []>} : vector<16x32xbf16>, vector<32x32xbf16>, vector<16x32xf32> -> vector<16x32xf32>
    %37 = arith.truncf %33 : vector<16x16xf32> to vector<16x16xbf16>
    %c0_15 = arith.constant 0 : index
    %c0_16 = arith.constant 0 : index
    %38 = vector.load %arg8[%c0_15, %c0_16] : memref<16x32xbf16, #tpu.memory_space<vmem>>, vector<16x32xbf16>
    %cst_17 = arith.constant dense<0.000000e+00> : vector<16x32xf32>
    %39 = tpu.matmul %37, %38, %cst_17 {dimension_numbers = #tpu.dot_dimension_numbers<[1], [0], [0], [1], [0, 0, 1, 1], [], []>} : vector<16x16xbf16>, vector<16x32xbf16>, vector<16x32xf32> -> vector<16x32xf32>
    %40 = arith.addf %36, %39 : vector<16x32xf32>
    %c0_18 = arith.constant 0 : index
    %c0_19 = arith.constant 0 : index
    %41 = vector.load %arg9[%c0_18, %c0_19] : memref<1x32xf32, #tpu.memory_space<vmem>>, vector<1x32xf32>
    %42 = vector.broadcast %41 : vector<1x32xf32> to vector<16x32xf32>
    %43 = arith.addf %40, %42 : vector<16x32xf32>
    %cst_20 = arith.constant dense<0.000000e+00> : vector<16xf32>
    %44 = vector.multi_reduction <add>, %43, %cst_20 [1] : vector<16x32xf32> to vector<16xf32>
    %45 = vector.shape_cast %44 : vector<16xf32> to vector<16x1xf32>
    %cst_21 = arith.constant 3.200000e+01 : f32
    %46 = vector.broadcast %cst_21 : f32 to vector<16x1xf32>
    %47 = arith.divf %45, %46 : vector<16x1xf32>
    %48 = arith.mulf %43, %43 : vector<16x32xf32>
    %cst_22 = arith.constant dense<0.000000e+00> : vector<16xf32>
    %49 = vector.multi_reduction <add>, %48, %cst_22 [1] : vector<16x32xf32> to vector<16xf32>
    %50 = vector.shape_cast %49 : vector<16xf32> to vector<16x1xf32>
    %cst_23 = arith.constant 3.200000e+01 : f32
    %51 = vector.broadcast %cst_23 : f32 to vector<16x1xf32>
    %52 = arith.divf %50, %51 : vector<16x1xf32>
    %53 = arith.mulf %47, %47 : vector<16x1xf32>
    %54 = arith.subf %52, %53 : vector<16x1xf32>
    %cst_24 = arith.constant 0.000000e+00 : f32
    %55 = vector.broadcast %cst_24 : f32 to vector<16x1xf32>
    %56 = arith.maximumf %54, %55 : vector<16x1xf32>
    %57 = vector.broadcast %47 : vector<16x1xf32> to vector<16x32xf32>
    %58 = arith.subf %43, %57 : vector<16x32xf32>
    %cst_25 = arith.constant 9.99999974E-6 : f32
    %59 = vector.broadcast %cst_25 : f32 to vector<16x1xf32>
    %60 = arith.addf %56, %59 : vector<16x1xf32>
    %61 = math.rsqrt %60 : vector<16x1xf32>
    %62 = vector.broadcast %61 : vector<16x1xf32> to vector<16x32xf32>
    %63 = arith.mulf %58, %62 : vector<16x32xf32>
    %c0_26 = arith.constant 0 : index
    %c0_27 = arith.constant 0 : index
    %64 = vector.load %arg10[%c0_26, %c0_27] : memref<1x32xf32, #tpu.memory_space<vmem>>, vector<1x32xf32>
    %65 = vector.broadcast %64 : vector<1x32xf32> to vector<16x32xf32>
    %66 = arith.mulf %63, %65 : vector<16x32xf32>
    %c0_28 = arith.constant 0 : index
    %c0_29 = arith.constant 0 : index
    %67 = vector.load %arg11[%c0_28, %c0_29] : memref<1x32xf32, #tpu.memory_space<vmem>>, vector<1x32xf32>
    %68 = vector.broadcast %67 : vector<1x32xf32> to vector<16x32xf32>
    %69 = arith.addf %66, %68 : vector<16x32xf32>
    %70 = arith.negf %69 : vector<16x32xf32>
    %71 = math.exp %70 : vector<16x32xf32>
    %cst_30 = arith.constant 1.000000e+00 : f32
    %72 = vector.broadcast %cst_30 : f32 to vector<16x32xf32>
    %73 = arith.addf %72, %71 : vector<16x32xf32>
    %74 = arith.divf %72, %73 : vector<16x32xf32>
    %75 = arith.mulf %69, %74 : vector<16x32xf32>
    %76 = arith.truncf %75 : vector<16x32xf32> to vector<16x32xbf16>
    %c0_31 = arith.constant 0 : index
    %c0_32 = arith.constant 0 : index
    %77 = vector.load %arg12[%c0_31, %c0_32] : memref<32x32xbf16, #tpu.memory_space<vmem>>, vector<32x32xbf16>
    %cst_33 = arith.constant dense<0.000000e+00> : vector<16x32xf32>
    %78 = tpu.matmul %76, %77, %cst_33 {dimension_numbers = #tpu.dot_dimension_numbers<[1], [0], [0], [1], [0, 0, 1, 1], [], []>} : vector<16x32xbf16>, vector<32x32xbf16>, vector<16x32xf32> -> vector<16x32xf32>
    %c0_34 = arith.constant 0 : index
    %c0_35 = arith.constant 0 : index
    %79 = vector.load %arg13[%c0_34, %c0_35] : memref<1x32xf32, #tpu.memory_space<vmem>>, vector<1x32xf32>
    %80 = vector.broadcast %79 : vector<1x32xf32> to vector<16x32xf32>
    %81 = arith.addf %78, %80 : vector<16x32xf32>
    %82 = arith.addf %81, %0 : vector<16x32xf32>
    %c0_36 = arith.constant 0 : index
    %c0_37 = arith.constant 0 : index
    %83 = vector.load %arg14[%c0_36, %c0_37] : memref<16x32xf32, #tpu.memory_space<vmem>>, vector<16x32xf32>
    tpu.vector_store %arg14[%c0_36, %c0_37], %82 {strides = array<i32>} : memref<16x32xf32, #tpu.memory_space<vmem>>, vector<16x32xf32>,
    return
  }
  func.func @transform_0(%arg0: i32) -> (i32, i32) {
    %c0_i32 = arith.constant 0 : i32
    %c0_i32_0 = arith.constant 0 : i32
    return %arg0, %c0_i32 : i32, i32
  }
  func.func @transform_1(%arg0: i32) -> (i32, i32) {
    %c0_i32 = arith.constant 0 : i32
    %c0_i32_0 = arith.constant 0 : i32
    return %arg0, %c0_i32 : i32, i32
  }
  func.func @transform_2(%arg0: i32) -> (i32, i32) {
    %c0_i32 = arith.constant 0 : i32
    %c0_i32_0 = arith.constant 0 : i32
    %c0_i32_1 = arith.constant 0 : i32
    return %c0_i32, %c0_i32_0 : i32, i32
  }
  func.func @transform_3(%arg0: i32) -> (i32, i32) {
    %c0_i32 = arith.constant 0 : i32
    %c0_i32_0 = arith.constant 0 : i32
    %c0_i32_1 = arith.constant 0 : i32
    return %c0_i32, %c0_i32_0 : i32, i32
  }
  func.func @transform_4(%arg0: i32) -> (i32, i32) {
    %c0_i32 = arith.constant 0 : i32
    %c0_i32_0 = arith.constant 0 : i32
    %c0_i32_1 = arith.constant 0 : i32
    return %c0_i32, %c0_i32_0 : i32, i32
  }
  func.func @transform_5(%arg0: i32) -> (i32, i32) {
    %c0_i32 = arith.constant 0 : i32
    %c0_i32_0 = arith.constant 0 : i32
    %c0_i32_1 = arith.constant 0 : i32
    return %c0_i32, %c0_i32_0 : i32, i32
  }
  func.func @transform_6(%arg0: i32) -> (i32, i32) {
    %c0_i32 = arith.constant 0 : i32
    %c0_i32_0 = arith.constant 0 : i32
    %c0_i32_1 = arith.constant 0 : i32
    return %c0_i32, %c0_i32_0 : i32, i32
  }
  func.func @transform_7(%arg0: i32) -> (i32, i32) {
    %c0_i32 = arith.constant 0 : i32
    %c0_i32_0 = arith.constant 0 : i32
    %c0_i32_1 = arith.constant 0 : i32
    return %c0_i32, %c0_i32_0 : i32, i32
  }
  func.func @transform_8(%arg0: i32) -> (i32, i32) {
    %c0_i32 = arith.constant 0 : i32
    %c0_i32_0 = arith.constant 0 : i32
    %c0_i32_1 = arith.constant 0 : i32
    return %c0_i32, %c0_i32_0 : i32, i32
  }
  func.func @transform_9(%arg0: i32) -> (i32, i32) {
    %c0_i32 = arith.constant 0 : i32
    %c0_i32_0 = arith.constant 0 : i32
    %c0_i32_1 = arith.constant 0 : i32
    return %c0_i32, %c0_i32_0 : i32, i32
  }
  func.func @transform_10(%arg0: i32) -> (i32, i32) {
    %c0_i32 = arith.constant 0 : i32
    %c0_i32_0 = arith.constant 0 : i32
    %c0_i32_1 = arith.constant 0 : i32
    return %c0_i32, %c0_i32_0 : i32, i32
  }
  func.func @transform_11(%arg0: i32) -> (i32, i32) {
    %c0_i32 = arith.constant 0 : i32
    %c0_i32_0 = arith.constant 0 : i32
    %c0_i32_1 = arith.constant 0 : i32
    return %c0_i32, %c0_i32_0 : i32, i32
  }
  func.func @transform_12(%arg0: i32) -> (i32, i32) {
    %c0_i32 = arith.constant 0 : i32
    %c0_i32_0 = arith.constant 0 : i32
    %c0_i32_1 = arith.constant 0 : i32
    return %c0_i32, %c0_i32_0 : i32, i32
  }
  func.func @transform_13(%arg0: i32) -> (i32, i32) {
    %c0_i32 = arith.constant 0 : i32
    %c0_i32_0 = arith.constant 0 : i32
    return %arg0, %c0_i32 : i32, i32
  }
}

</mosaic_0001>

<bundles_post_ra>
// kernel: tpu_custom_call.1
= control target key start
LH: loop header
LB: loop body
LE: loop exit
PB: predicated region body
PF: predicated region fallthrough
CT: control target
= control target key end

     0   :  { %18 = vsyncpa [#allocation3], 0  ;;  %s970_s0 = inlined_call_operand.vmem [shape: f32[16,32], index: 0, kind: input, shape index: {}]   ;;  %s971_s1 = inlined_call_operand.vmem [shape: f32[16,3], index: 1, kind: input, shape index: {}]   ;;  %s972_s2 = inlined_call_operand.hbm [shape: f32[3,8], index: 2, kind: input, shape index: {}]   ;;  %s973_s3 = inlined_call_operand.vmem [shape: f32[1,8], index: 3, kind: input, shape index: {}]   ;;  %s974_s4 = inlined_call_operand.hbm [shape: f32[8,16], index: 4, kind: input, shape index: {}]   ;;  %s975_s5 = inlined_call_operand.vmem [shape: f32[1,16], index: 5, kind: input, shape index: {}]   ;;  %s976_s6 = inlined_call_operand.vmem [shape: bf16[32,32], index: 6, kind: input, shape index: {}]   ;;  %s977_s7 = inlined_call_operand.hbm [shape: bf16[16,32], index: 7, kind: input, shape index: {}]   ;;  %s978_s8 = inlined_call_operand.hbm [shape: f32[1,32], index: 8, kind: input, shape index: {}]   ;;  %s979_s9 = inlined_call_operand.vmem [shape: f32[1,32], index: 9, kind: input, shape index: {}]   ;;  %s980_s10 = inlined_call_operand.vmem [shape: f32[1,32], index: 10, kind: input, shape index: {}]   ;;  %s981_s11 = inlined_call_operand.vmem [shape: bf16[32,32], index: 11, kind: input, shape index: {}]   ;;  %s982_s12 = inlined_call_operand.vmem [shape: f32[1,32], index: 12, kind: input, shape index: {}]   ;;  %s983_s13 = inlined_call_operand.hbm [shape: f32[16,32], index: 13, kind: output, shape index: {}]  }
   0x1   :  { %19 = vsyncpa [#allocation6], 0 }
   0x2   :  { %20 = vsyncpa [#allocation9], 0 }
   0x3   :  { %21 = vsyncpa [#allocation4], 0  ;;  %s763_s25 = smov [#allocation5]   ;;  %s764_s27 = smov [#allocation2]  }
   0x4   :  { %s44_s26 = sshll.u32 %s763_s25, 4  ;;  %s32_s28 = sshll.u32 %s764_s27, 4  ;;  %s45_s26 = int_to_ptr.vmem [resolvable:$true] %s44_s26  ;;  %s33_s28 = int_to_ptr.vmem [resolvable:$true] %s32_s28 }
   0x5   :  { %s645_s14 = scalar_lea.hbm %s974_s4, 128 }
   0x6   :  { %p646_p0 = scmp.ne.s32.totalorder %s974_s4, %s645_s14  ;;  %p649_p1 = scmp.lt.u32.totalorder %s645_s14, %s974_s4 }
   0x8   :  { %p651_p2 = pnand %p649_p1, %p646_p0 }
   0xa   :  { %654 = shalt.err (!%p651_p2)
}
   0xb   :  { %s655_s19 = scalar_lea.vmem %s45_s26, 128  ;;  %p660_p4 = scmp.lt.s32.totalorder %s45_s26, %s45_s26 }
   0xc   :  { %p656_p3 = scmp.ne.s32.totalorder %s45_s26, %s655_s19  ;;  %p661_p5 = scmp.lt.s32.totalorder %s655_s19, %s655_s19 }
   0xe   :  { %p662_p6 = por %p661_p5, %p660_p4 }
  0x10   :  { %p663_p7 = pnand %p662_p6, %p656_p3 }
  0x12   :  { %666 = shalt.err (!%p663_p7)
}
  0x13   :  { %47 = dma.hbm_to_vmem [thread:$0]  %s974_s4, 128, %s45_s26, [#allocation6]  }
  0x14   :  { %s667_s24 = scalar_lea.hbm %s972_s2, 64 }
  0x15   :  { %p668_p8 = scmp.ne.s32.totalorder %s972_s2, %s667_s24  ;;  %p671_p9 = scmp.lt.u32.totalorder %s667_s24, %s972_s2 }
  0x17   :  { %p673_p10 = pnand %p671_p9, %p668_p8 }
  0x19   :  { %676 = shalt.err (!%p673_p10)
}
  0x1a   :  { %s677_s14 = scalar_lea.vmem %s33_s28, 64  ;;  %p682_p12 = scmp.lt.s32.totalorder %s33_s28, %s33_s28 }
  0x1b   :  { %p678_p11 = scmp.ne.s32.totalorder %s33_s28, %s677_s14  ;;  %p683_p13 = scmp.lt.s32.totalorder %s677_s14, %s677_s14 }
  0x1d   :  { %p684_p0 = por %p683_p13, %p682_p12 }
  0x1f   :  { %p685_p1 = pnand %p684_p0, %p678_p11 }
  0x21   :  { %688 = shalt.err (!%p685_p1)
}
  0x22   :  { %35 = dma.hbm_to_vmem [thread:$0]  %s972_s2, 64, %s33_s28, [#allocation3]  }
  0x23   :  { %s765_s15 = smov [#allocation7]   ;;  %s689_s19 = scalar_lea.hbm %s977_s7, 128 }
  0x24   :  { %s57_s16 = sshll.u32 %s765_s15, 4  ;;  %p690_p2 = scmp.ne.s32.totalorder %s977_s7, %s689_s19  ;;  %s58_s16 = int_to_ptr.vmem [resolvable:$true] %s57_s16 }
  0x25   :  { %p693_p3 = scmp.lt.u32.totalorder %s689_s19, %s977_s7 }
  0x27   :  { %p695_p4 = pnand %p693_p3, %p690_p2 }
  0x29   :  { %698 = shalt.err (!%p695_p4)
}
  0x2a   :  { %s699_s24 = scalar_lea.vmem %s58_s16, 128  ;;  %p704_p6 = scmp.lt.s32.totalorder %s58_s16, %s58_s16 }
  0x2b   :  { %p700_p5 = scmp.ne.s32.totalorder %s58_s16, %s699_s24  ;;  %p705_p7 = scmp.lt.s32.totalorder %s699_s24, %s699_s24 }
  0x2d   :  { %p706_p8 = por %p705_p7, %p704_p6 }
  0x2f   :  { %p707_p9 = pnand %p706_p8, %p700_p5 }
  0x31   :  { %710 = shalt.err (!%p707_p9)
}
  0x32   :  { %s766_s2 = smov 64   ;;  %s767_s28 = smov 4  }
  0x33   :  { %63 = dma.hbm_to_vmem [thread:$0]  %s977_s7, 128, %s58_s16, [#allocation6], %s766_s2, %s766_s2, %s767_s28  }
  0x34   :  { %s768_s29 = smov [#allocation8]   ;;  %s711_s26 = scalar_lea.hbm %s978_s8, 16 }
  0x35   :  { %s70_s30 = sshll.u32 %s768_s29, 4  ;;  %p712_p10 = scmp.ne.s32.totalorder %s978_s8, %s711_s26  ;;  %s71_s30 = int_to_ptr.vmem [resolvable:$true] %s70_s30 }
  0x36   :  { %p715_p11 = scmp.lt.u32.totalorder %s711_s26, %s978_s8 }
  0x38   :  { %p717_p12 = pnand %p715_p11, %p712_p10 }
  0x3a   :  { %720 = shalt.err (!%p717_p12)
}
  0x3b   :  { %s721_s20 = scalar_lea.vmem %s71_s30, 16  ;;  %s725_s7 = scalar_lea.vmem %s71_s30, 32 }
  0x3c   :  { %p722_p13 = scmp.ne.s32.totalorder %s71_s30, %s721_s20  ;;  %p726_p0 = scmp.lt.s32.totalorder %s71_s30, %s71_s30 }
  0x3d   :  { %p727_p1 = scmp.lt.s32.totalorder %s725_s7, %s721_s20 }
  0x3f   :  { %p728_p2 = por %p727_p1, %p726_p0 }
  0x41   :  { %p729_p3 = pnand %p728_p2, %p722_p13 }
  0x43   :  { %732 = shalt.err (!%p729_p3)
}
  0x44   :  { %73 = dma.hbm_to_vmem [thread:$0]  %s978_s8, 16, %s71_s30, [#allocation9]  }
  0x45   :  { %755 = dma.done.wait [#allocation3], 64  }
  0x46   :  { %756 = vsyncadd [#allocation3], 4294967232 }
  0x47   :  { %757 = dma.done.wait [#allocation6], 256  }
  0x48   :  { %758 = vsyncadd [#allocation6], 4294967040 }
  0x49   :  { %759 = dma.done.wait [#allocation9], 16  }
  0x4a   :  { %760 = vsyncadd [#allocation9], 4294967280  ;;  %v769_v0 = vmov 0   ;;  %v98_v1 = vld [vmem:[%s971_s1 + $0x8] sm:$0xff]  ;;  %v97_v2 = vld [vmem:[%s971_s1] sm:$0xff]  ;;  %v770_v3 = vmov 1   ;;  %v110_v7 = vlaneseq }
  0x4b   :  { %616 = vset.pattern.permute.xlu1 %v769_v0  ;;  %614 = vset.pattern.permute.xlu0 %v769_v0  ;;  %v771_v4 = vmov 2   ;;  %v171_v5 = vld [vmem:[#allocation5] sm:$0xff]  ;;  %v772_v6 = vmov 0.0   ;;  %v99_v13 = vld [vmem:[#allocation2] sm:$0x7]  ;;  %vm179_vm0 = vcmask 64512  }
  0x4c   :  { %107 = vperm.xlu1 %616, %v98_v1   ;;  %102 = vperm.xlu0 %614, %v97_v2   ;;  %v111_v8 = vshrl.u32 %v110_v7, 7  ;;  %v542_v30 = vld [vmem:[%s973_s3] ss:$0 sm:$0xff]  ;;  %v621_v46 = vld [vmem:[%s976_s6 + $0x8] sm:$0xff]   ;;  %vm773_vm1 = vmmov 0   ;;  %vm332_vm2 = vcmask 261120  }
  0x4d   :  { %573 = vmatprep.subr.mxu0 %v171_v5  ;;  %578 = vmatprep.subr.bf16.mxu1 %v772_v6  ;;  %v620_v45 = vld [vmem:[%s976_s6] sm:$0xff]   ;;  %v921_v48 = vld [vmem:[%s970_s0 + $0x8] sm:$0xff]  ;;  %vm275_vm3 = vcmask 130048   ;;  %v553_v62 = vld [vmem:[#allocation8] ss:$0 sm:$0xff]  ;;  %s774_s7 = smov [#allocation10]  }
  0x4e   :  { %574 = vmatpush3.msra.mxu0 %v171_v5  ;;  %v126_v9 = vsub.s32 1, %v111_v8  ;;  %v112_v12 = vsub.s32 0, %v111_v8  ;;  %v142_v15 = vsub.s32 2, %v111_v8  ;;  %v916_v47 = vld [vmem:[%s970_s0] sm:$0xff]  ;;  %v622_v49 = vld [vmem:[#allocation7] sm:$0xff]   ;;  %580 = vmatprep.mubr.msk.bf16.mxu1 %vm773_vm1, %v772_v6  ;;  %s528_s16 = sshll.u32 %s774_s7, 4  ;;  %s529_s16 = int_to_ptr.vmem [resolvable:$true] %s528_s16 }
  0x4f   :  { %584 = vmatprep.subr.bf16.mxu0 %v772_v6  ;;  %v261_v50 = vpack.c.bf16 %v921_v48, %v916_v47  ;;  %579 = vmatpush3.bf16.msra.mxu1 %v622_v49  ;;  %v545_v51 = vld [vmem:[%s975_s5] ss:$0 sm:$0xff]  ;;  %s733_s21 = scalar_lea.vmem %s529_s16, 256  ;;  %p738_p5 = scmp.lt.s32.totalorder %s529_s16, %s529_s16 }
  0x50   :  { %617 = vset.pattern.permute.xlu1 %v770_v3  ;;  %615 = vset.pattern.permute.xlu0 %v770_v3  ;;  %v127_v14 = vrot.slane %v99_v13, %v126_v9  ;;  %v113_v16 = vrot.slane %v99_v13, %v112_v12  ;;  %v143_v21 = vrot.slane %v99_v13, %v142_v15  ;;  %v623_v13 = vld [vmem:[%s981_s11] sm:$0xff]   ;;  %p734_p4 = scmp.ne.s32.totalorder %s529_s16, %s733_s21  ;;  %p739_p6 = scmp.lt.s32.totalorder %s733_s21, %s733_s21 }
  0x51   :  { %121 = vperm.xlu1 %617, %v98_v1   ;;  %117 = vperm.xlu0 %615, %v97_v2  }
  0x52   :  { %592 = vmatprep.subr.bf16.mxu1 %v772_v6  ;;  %p740_p7 = por %p739_p6, %p738_p5 }
  0x54   :  { %p741_p8 = pnand %p740_p7, %p734_p4 }
  0x55   :  { %618 = vset.pattern.permute.xlu1 %v771_v4  ;;  %619 = vset.pattern.permute.xlu0 %v771_v4 }
  0x56   :  { %133 = vperm.xlu1 %618, %v97_v2   ;;  %137 = vperm.xlu0 %619, %v98_v1  }
  0xcb   :  { %v108_v10 = vpop.permute.xlu1 %107  ;;  %v103_v11 = vpop.permute.xlu0 %102 }
  0xcc   :  { %v115_v22 = vmul.f32 %v113_v16, %v108_v10  ;;  %v114_v23 = vmul.f32 %v113_v16, %v103_v11 }
  0xd0   :  { %v122_v17 = vpop.permute.xlu1 %121  ;;  %v118_v18 = vpop.permute.xlu0 %117 }
  0xd1   :  { %v129_v19 = vmul.f32 %v127_v14, %v122_v17  ;;  %v128_v20 = vmul.f32 %v127_v14, %v118_v18  ;;  %v624_v14 = vld [vmem:[%s981_s11 + $0x8] sm:$0xff]  }
  0xd3   :  { %v131_v26 = vadd.f32 %v129_v19, %v115_v22  ;;  %v130_v27 = vadd.f32 %v128_v20, %v114_v23 }
  0xd5   :  { %v134_v24 = vpop.permute.xlu1 %133  ;;  %v138_v25 = vpop.permute.xlu0 %137 }
  0xd6   :  { %v144_v28 = vmul.f32 %v143_v21, %v134_v24  ;;  %v145_v29 = vmul.f32 %v143_v21, %v138_v25 }
  0xd8   :  { %v146_v31 = vadd.f32 %v144_v28, %v130_v27  ;;  %v147_v32 = vadd.f32 %v145_v29, %v131_v26 }
  0xda   :  { %v156_v33 = vadd.f32 %v542_v30, %v147_v32  ;;  %v155_v34 = vadd.f32 %v542_v30, %v146_v31  ;;  %v554_v32 = vld [vmem:[%s979_s9] ss:$0 sm:$0xff] }
  0xdc   :  { %v544_v35 = vmul.f32 -1.442695, %v156_v33  ;;  %v543_v36 = vmul.f32 -1.442695, %v155_v34 }
  0xde   :  { %625 = vpow2.f32 %v544_v35 }
  0xdf   :  { %627 = vpow2.f32 %v543_v36  ;;  %v555_v36 = vld [vmem:[%s980_s10] ss:$0 sm:$0xff] }
  0xe8   :  { %v626_v37 = vpop.eup %625 }
  0xe9   :  { %v628_v38 = vpop.eup %627  ;;  %v164_v39 = vadd.f32 1.0, %v626_v37 }
  0xea   :  { %v163_v40 = vadd.f32 1.0, %v628_v38 }
  0xeb   :  { %629 = vrcp.f32 %v164_v39 }
  0xec   :  { %631 = vrcp.f32 %v163_v40 }
  0xf5   :  { %v630_v41 = vpop.eup %629 }
  0xf6   :  { %v632_v42 = vpop.eup %631  ;;  %v170_v43 = vmul.f32 %v630_v41, %v156_v33 }
  0xf7   :  { %v169_v44 = vmul.f32 %v632_v42, %v155_v34 }
  0xf9   :  { %575 = vmatprep.mubr.msk.f32.mxu0 %vm179_vm0, %v169_v44 }
  0xfa   :  { %576 = vmatmul.mubr.msk.f32.vlgmr.msra.gmra.mrb[0].mxu0 %vm179_vm0, %v170_v43 }
  0xfb   :  { %585 = vmatpush3.bf16.msra.mxu0 %v620_v45  ;;  %588 = vmatprep.mubr.msk.bf16.mxu0 %vm773_vm1, %v772_v6 }
  0xfc   :  { %586 = vmatprep.subr.bf16.mxu0 %v772_v6 }
  0xff   :  { %587 = vmatpush3.bf16.msra.mxu0 %v621_v46 }
 0x102   :  { %589 = vmatmul.mubr.msk.bf16.vlgmr.msra.gmra.mrb[4].mxu0 %vm332_vm2, %v261_v50 }
 0x1cd   :  { %v577_v52 = vpop.f32.mrb[0].mxu0 }
 0x1ce   :  { %v258_v53 = vadd.f32 %v577_v52, %v545_v51  ;;  %v252_v54 = vpop.f32.mrb[1].mxu0 }
 0x1cf   :  { %v253_v55 = vadd.f32 %v545_v51, %v252_v54 }
 0x1d1   :  { %v266_v56 = vpack.c.bf16 %v258_v53, %v253_v55  ;;  %v558_v55 = vld [vmem:[%s982_s12] ss:$0 sm:$0xff] }
 0x1d3   :  { %581 = vmatmul.mubr.msk.bf16.vlgmr.msra.gmra.mrb[0].mxu1 %vm275_vm3, %v266_v56 }
 0x1d4   :  { %596 = vmatprep.mubr.msk.bf16.mxu1 %vm773_vm1, %v772_v6  ;;  %593 = vmatpush3.bf16.msra.mxu1 %v623_v13 }
 0x1d5   :  { %v370_v57 = vpop.f32.mrb[4].mxu0  ;;  %594 = vmatprep.subr.bf16.mxu1 %v772_v6 }
 0x1d6   :  { %v590_v58 = vpop.f32.mrb[5].mxu0 }
 0x1d7   :  { %v373_v59 = vpop.f32.mrb[6].mxu0 }
 0x1d8   :  { %v591_v60 = vpop.f32.mrb[7].mxu0  ;;  %595 = vmatpush3.bf16.msra.mxu1 %v624_v14 }
 0x2a6   :  { %v313_v61 = vpop.f32.mrb[0].mxu1 }
 0x2a7   :  { %v371_v63 = vadd.f32 %v370_v57, %v313_v61  ;;  %v582_v0 = vpop.f32.mrb[1].mxu1 }
 0x2a8   :  { %v316_v1 = vpop.f32.mrb[2].mxu1 }
 0x2a9   :  { %v384_v2 = vadd.f32 %v553_v62, %v371_v63  ;;  %v374_v3 = vadd.f32 %v373_v59, %v316_v1  ;;  %v583_v4 = vpop.f32.mrb[3].mxu1 }
 0x2ab   :  { %v385_v5 = vadd.f32 %v553_v62, %v374_v3  ;;  %v386_v7 = vsel %vm332_vm2, %v384_v2, 0.0  ;;  %v395_v8 = vmul.f32 %v384_v2, %v384_v2 }
 0x2ac   :  { %387 = vadd.xlane.f32.xlu1 %v386_v7 }
 0x2ad   :  { %v389_v9 = vsel %vm332_vm2, %v385_v5, 0.0  ;;  %v396_v10 = vmul.f32 %v385_v5, %v385_v5  ;;  %v397_v11 = vsel %vm332_vm2, %v395_v8, 0.0 }
 0x2ae   :  { %390 = vadd.xlane.f32.xlu0 %v389_v9 }
 0x2af   :  { %v400_v12 = vsel %vm332_vm2, %v396_v10, 0.0 }
 0x2b0   :  { %398 = vadd.xlane.f32.xlu1 %v397_v11 }
 0x2b2   :  { %401 = vadd.xlane.f32.xlu0 %v400_v12 }
 0x339   :  { %v388_v15 = vpop.xlane.xlu1 %387 }
 0x33a   :  { %v393_v16 = vmul.f32 0.03125, %v388_v15 }
 0x33b   :  { %v391_v17 = vpop.xlane.xlu0 %390 }
 0x33c   :  { %v394_v18 = vmul.f32 0.03125, %v391_v17  ;;  %v405_v20 = vmul.f32 %v393_v16, %v393_v16  ;;  %v411_v6 = vsub.f32 %v384_v2, %v393_v16 }
 0x33d   :  { %v399_v19 = vpop.xlane.xlu1 %398 }
 0x33e   :  { %v403_v21 = vmul.f32 0.03125, %v399_v19  ;;  %v406_v23 = vmul.f32 %v394_v18, %v394_v18  ;;  %v412_v33 = vsub.f32 %v385_v5, %v394_v18 }
 0x33f   :  { %v402_v22 = vpop.xlane.xlu0 %401 }
 0x340   :  { %v407_v24 = vsub.f32 %v403_v21, %v405_v20  ;;  %v404_v25 = vmul.f32 0.03125, %v402_v22 }
 0x342   :  { %v409_v26 = vmax.f32 %v407_v24, 0.0  ;;  %v408_v27 = vsub.f32 %v404_v25, %v406_v23 }
 0x344   :  { %v413_v28 = vadd.f32 1e-05, %v409_v26  ;;  %v410_v29 = vmax.f32 %v408_v27, 0.0 }
 0x346   :  { %633 = vrsqrt.f32 %v413_v28  ;;  %v414_v30 = vadd.f32 1e-05, %v410_v29 }
 0x348   :  { %635 = vrsqrt.f32 %v414_v30 }
 0x350   :  { %v634_v31 = vpop.eup %633 }
 0x351   :  { %v417_v34 = vmul.f32 %v634_v31, %v411_v6 }
 0x352   :  { %v636_v35 = vpop.eup %635 }
 0x353   :  { %v426_v37 = vmul.f32 %v554_v32, %v417_v34  ;;  %v418_v38 = vmul.f32 %v636_v35, %v412_v33 }
 0x355   :  { %v427_v39 = vmul.f32 %v554_v32, %v418_v38  ;;  %v435_v40 = vadd.f32 %v555_v36, %v426_v37 }
 0x357   :  { %v436_v41 = vadd.f32 %v555_v36, %v427_v39  ;;  %v556_v42 = vmul.f32 -1.442695, %v435_v40 }
 0x359   :  { %637 = vpow2.f32 %v556_v42  ;;  %v557_v43 = vmul.f32 -1.442695, %v436_v41 }
 0x35b   :  { %639 = vpow2.f32 %v557_v43 }
 0x363   :  { %v638_v44 = vpop.eup %637 }
 0x364   :  { %v443_v45 = vadd.f32 1.0, %v638_v44 }
 0x365   :  { %v640_v46 = vpop.eup %639 }
 0x366   :  { %v444_v49 = vadd.f32 1.0, %v640_v46  ;;  %641 = vrcp.f32 %v443_v45 }
 0x368   :  { %643 = vrcp.f32 %v444_v49 }
 0x370   :  { %v642_v50 = vpop.eup %641 }
 0x371   :  { %v449_v52 = vmul.f32 %v642_v50, %v435_v40 }
 0x372   :  { %v644_v51 = vpop.eup %643 }
 0x373   :  { %v450_v53 = vmul.f32 %v644_v51, %v436_v41 }
 0x375   :  { %v451_v54 = vpack.c.bf16 %v450_v53, %v449_v52 }
 0x377   :  { %597 = vmatmul.mubr.msk.bf16.vlgmr.msra.gmra.mrb[4].mxu1 %vm332_vm2, %v451_v54 }
 0x44a   :  { %v512_v56 = vpop.f32.mrb[4].mxu1 }
 0x44b   :  { %v513_v57 = vadd.f32 %v558_v55, %v512_v56  ;;  %v598_v58 = vpop.f32.mrb[5].mxu1 }
 0x44c   :  { %v515_v59 = vpop.f32.mrb[6].mxu1 }
 0x44d   :  { %v519_v60 = vadd.f32 %v513_v57, %v916_v47  ;;  %v516_v61 = vadd.f32 %v558_v55, %v515_v59  ;;  %v599_v62 = vpop.f32.mrb[7].mxu1 }
 0x44f   :  { %521 = vst.msk [vmem:[#allocation10] sm:$0xff] %vm332_vm2, %v519_v60  ;;  %v520_v63 = vadd.f32 %v516_v61, %v921_v48 }
 0x451   :  { %522 = vst.msk [vmem:[#allocation10 + $0x8] sm:$0xff] %vm332_vm2, %v520_v63 }
 0x452   :  { %744 = shalt.err (!%p741_p8)
}
 0x453   :  { %s745_s23 = scalar_lea.hbm %s983_s13, 256 }
 0x454   :  { %p746_p9 = scmp.ne.s32.totalorder %s983_s13, %s745_s23  ;;  %p749_p10 = scmp.lt.u32.totalorder %s745_s23, %s983_s13 }
 0x456   :  { %p751_p11 = pnand %p749_p10, %p746_p9 }
 0x458   :  { %754 = shalt.err (!%p751_p11)
}
 0x459   :  { %s775_s3 = smov 128   ;;  %s776_s28 = smov 8  }
 0x45a   :  { %534 = dma.vmem_to_hbm [thread:$0]  %s529_s16, 256, %s983_s13, [#allocation4], %s775_s3, %s775_s3, %s776_s28  }
 0x45b   :  { %761 = dma.done.wait [#allocation4], 256  }
 0x45c   :  { %762 = vsyncadd [#allocation4], 4294967040 }
 0x45d   :  { %538 = vsyncpa [#allocation3], 1 }
 0x45e   :  { %539 = vsyncpa [#allocation6], 1 }
 0x45f   :  { %540 = vsyncpa [#allocation9], 1 }
 0x460   :  { %541 = vsyncpa [#allocation4], 1 }

</bundles_post_ra>
